<compile_context>
chip_gen: v6e
topology: v6e:2x2x1
jax: 0.10.0
libtpu: 0.0.40
codegen_flags: <defaults>
</compile_context>

<pallas_src>
import functools
import math

import jax
import jax.numpy as jnp
import numpy as np
from jax.experimental import pallas as pl
from jax.experimental.pallas import tpu as pltpu


def _perceiver_attention_kernel(x_ref, lat_ref, wq_ref, bq_ref, wkvx_ref,
                                bkvx_ref, wkvl_ref, bkvl_ref, wo_ref, out_ref,
                                *, heads, dim_head, col_chunk, compute_dtype):
    bt, n1, d = x_ref.shape
    _, n2, _ = lat_ref.shape
    dh2 = 2 * dim_head
    inner2 = heads * dh2
    d_out = out_ref.shape[-1]

    def normalize(v):
        # LayerNorm statistics in f32; gamma/beta are folded into the weights.
        mu = jnp.mean(v, axis=-1, keepdims=True)
        var = jnp.mean(jnp.square(v - mu), axis=-1, keepdims=True)
        return (v - mu) * jax.lax.rsqrt(var + 1e-5)

    x_hat = normalize(x_ref[...].astype(jnp.float32)).astype(compute_dtype)
    lat_hat = normalize(lat_ref[...].astype(jnp.float32)).astype(compute_dtype)

    x2d = x_hat.reshape(bt * n1, d)
    l2d = lat_hat.reshape(bt * n2, d)

    # q projection: scale^2 and gamma2 folded host-side; per-head column groups
    # are [q_h | 0] so the padded q contracts against packed [k_h | v_h].
    q = (jnp.dot(l2d, wq_ref[...], preferred_element_type=jnp.float32)
         + bq_ref[...]).astype(compute_dtype)                    # (bt*n2, inner2)

    # latent half of the kv projection (gamma2/beta2 folded) -- small.
    kv_l = (jnp.dot(l2d, wkvl_ref[...], preferred_element_type=jnp.float32)
            + bkvl_ref[...]).astype(compute_dtype)               # (bt*n2, inner2)

    # image-feature half of the kv projection (gamma1/beta1 folded), computed
    # in column chunks so the f32 MXU result never exceeds (bt*n1, col_chunk).
    chunks = []
    for c0 in range(0, inner2, col_chunk):
        c1 = min(inner2, c0 + col_chunk)
        ch = (jnp.dot(x2d, wkvx_ref[:, c0:c1],
                      preferred_element_type=jnp.float32)
              + bkvx_ref[:, c0:c1]).astype(compute_dtype)
        chunks.append(ch)
    kv_x2d = chunks[0] if len(chunks) == 1 else jnp.concatenate(chunks, axis=-1)

    kv_x = kv_x2d.reshape(bt, n1, inner2)
    kv_l3 = kv_l.reshape(bt, n2, inner2)
    q3 = q.reshape(bt, n2, inner2)

    # Per-head attention.  `heads` is small and static so the loop unrolls; the
    # per-head score/prob buffers die each iteration, only the small o_h slabs
    # survive until the merge.  Every lane slice below is dh2-wide at a
    # dh2-aligned offset.
    o_heads = []
    for h in range(heads):
        lo, hi = h * dh2, (h + 1) * dh2
        q_h = q3[:, :, lo:hi]                                    # (bt, n2, dh2), v-half zero
        kv_h = jnp.concatenate([kv_x[:, :, lo:hi], kv_l3[:, :, lo:hi]],
                               axis=1)                           # (bt, nk, dh2)

        # q_h's zero columns kill the v contribution: s == q_h @ k_h^T.
        s = jnp.einsum('bqd,bkd->bqk', q_h, kv_h,
                       preferred_element_type=jnp.float32)       # (bt, n2, nk)
        s = s - jnp.max(s, axis=-1, keepdims=True)
        p = jnp.exp(s)
        p = p * pl.reciprocal(jnp.sum(p, axis=-1, keepdims=True), approx=True)

        # columns [p@k_h | p@v_h]; the p@k half is zeroed by Wo's packed rows.
        o_h = jnp.einsum('bqk,bkd->bqd', p.astype(compute_dtype), kv_h,
                         preferred_element_type=jnp.float32)     # (bt, n2, dh2)
        o_heads.append(o_h.astype(compute_dtype))

    merged = o_heads[0] if heads == 1 else jnp.concatenate(o_heads, axis=-1)
    out = jnp.dot(merged.reshape(bt * n2, inner2), wo_ref[...],
                  preferred_element_type=jnp.float32)
    out_ref[...] = out.reshape(bt, n2, d_out).astype(out_ref.dtype)


def prepare_params(params, *, heads, dim_head, compute_dtype=jnp.bfloat16):
    """One-time host-side parameter prep.

    * folds the LayerNorm affine (gamma rows / beta@W bias) into the
      projections (separate copies for the x / latent paths),
    * folds the attention scale^2 into Wq / its bias,
    * regroups kv columns per head as [k_h | v_h] (2*dim_head-wide groups),
      pads Wq per head as [q_h | 0] and Wo rows as [0 ; Wo_h],
    * casts matmul weights to bf16, keeps biases f32.
    """
    dim = params['to_q_w'].shape[1]
    inner = heads * dim_head
    inner2 = 2 * inner
    scale2 = 1.0 / math.sqrt(dim_head)          # (dim_head ** -0.25) ** 2

    g1 = params['norm1_gamma'].astype(jnp.float32)
    b1 = params['norm1_beta'].astype(jnp.float32)
    g2 = params['norm2_gamma'].astype(jnp.float32)
    b2 = params['norm2_beta'].astype(jnp.float32)

    wq_t = params['to_q_w'].astype(jnp.float32).T        # (dim, inner)
    wkv_t = params['to_kv_w'].astype(jnp.float32).T      # (dim, 2*inner)  [K | V]
    wo_t = params['to_out_w'].astype(jnp.float32).T      # (inner, dim)

    def pack_kv_cols(m):   # (rows, 2*inner) [K_all|V_all] -> per-head [k_h|v_h]
        r = m.shape[0]
        k = m[:, :inner].reshape(r, heads, dim_head)
        v = m[:, inner:].reshape(r, heads, dim_head)
        return jnp.concatenate([k, v], axis=-1).reshape(r, inner2)

    def pad_q_cols(m):     # (rows, inner) -> per-head [q_h | 0]
        r = m.shape[0]
        qh = m.reshape(r, heads, dim_head)
        return jnp.concatenate([qh, jnp.zeros_like(qh)], axis=-1).reshape(r, inner2)

    wq_p = pad_q_cols(scale2 * (g2[:, None] * wq_t))
    bq_p = pad_q_cols(scale2 * (b2 @ wq_t)[None, :])
    wkv_x = pack_kv_cols(g1[:, None] * wkv_t)
    bkv_x = pack_kv_cols((b1 @ wkv_t)[None, :])
    wkv_l = pack_kv_cols(g2[:, None] * wkv_t)
    bkv_l = pack_kv_cols((b2 @ wkv_t)[None, :])

    wo_h = wo_t.reshape(heads, dim_head, dim)
    wo_p = jnp.concatenate([jnp.zeros_like(wo_h), wo_h], axis=1).reshape(inner2, dim)

    return {
        'wq': wq_p.astype(compute_dtype),
        'bq': bq_p.astype(jnp.float32),
        'wkv_x': wkv_x.astype(compute_dtype),
        'bkv_x': bkv_x.astype(jnp.float32),
        'wkv_l': wkv_l.astype(compute_dtype),
        'bkv_l': bkv_l.astype(jnp.float32),
        'wo': wo_p.astype(compute_dtype),
    }


def _col_chunk(inner2, dim_head):
    """Chunk width for the x-side kv projection: <=512 columns, multiple of the
    per-head group width when possible (keeps the weight slices lane-aligned)."""
    dh2 = 2 * dim_head
    if inner2 <= 512:
        return inner2
    return max(dh2, (512 // dh2) * dh2)


def _footprint_bytes(bt, *, n1, n2, dim, inner2, col_chunk, in_bytes, out_bytes):
    """Conservative per-step VMEM footprint: pipelined blocks + resident weights
    (counted double-buffered) + in-kernel intermediates."""
    f32, bf16 = 4, 2
    nk = n1 + n2
    moving = 2 * bt * dim * (n1 * in_bytes + n2 * in_bytes + n2 * out_bytes)
    weights = 2 * (4 * dim * inner2 * bf16 + 3 * inner2 * f32)
    inter = (bt * (n1 + n2) * dim * (f32 + bf16)          # normalized x / latents
             + 2 * bt * n2 * inner2 * (f32 + bf16)        # q, kv_l (f32 result + bf16)
             + bt * n1 * min(inner2, col_chunk) * f32     # one f32 chunk of kv_x
             + bt * n1 * inner2 * bf16                    # kv_x (bf16)
             + 2 * bt * n2 * nk * f32                     # per-head scores + probs
             + bt * n2 * inner2 * bf16                    # merged head outputs
             + bt * n2 * dim * f32)                       # output accumulator
    return moving + weights + inter


def _pick_block_b(batch, *, budget_bytes, **fp_kw):
    """Largest divisor of batch (<=8) whose footprint fits the budget, while
    keeping >= 2 grid steps when batch >= 2 (pipelining / v7x megacore)."""
    max_bt = 1 if batch < 2 else max(1, batch // 2)
    best = 1
    for bt in range(1, min(max_bt, 8) + 1):
        if batch % bt:
            continue
        if _footprint_bytes(bt, **fp_kw) <= budget_bytes:
            best = bt
    return best


def perceiver_attention(x, latents, prepared, *, heads, dim_head,
                        block_b=None, compute_dtype=jnp.bfloat16):
    """x: (B, n1, dim), latents: (B, n2, dim) -> (B, n2, dim)."""
    B, n1, dim = x.shape
    Bl, n2, dim_l = latents.shape
    assert B == Bl and dim == dim_l, "x and latents must share batch / feature dims"
    inner2 = 2 * heads * dim_head
    assert prepared['wq'].shape == (dim, inner2)

    out_dtype = latents.dtype
    # bf16 inputs halve the HBM->VMEM DMA of the dominant x block; LN statistics
    # stay f32 inside the kernel.
    x_c = x.astype(compute_dtype)
    lat_c = latents.astype(compute_dtype)

    col_chunk = _col_chunk(inner2, dim_head)
    fp_kw = dict(n1=n1, n2=n2, dim=dim, inner2=inner2, col_chunk=col_chunk,
                 in_bytes=jnp.dtype(compute_dtype).itemsize,
                 out_bytes=jnp.dtype(out_dtype).itemsize)

    budget = 40 << 20                      # headroom under the 48 MiB cap below
    bt = block_b or _pick_block_b(B, budget_bytes=budget, **fp_kw)
    assert B % bt == 0
    grid = (B // bt,)

    # v7x has only 64 MiB physical VMEM per TensorCore: cap the scoped request
    # at 48 MiB and derive it from the real footprint.
    vmem_limit = int(min(48 << 20,
                         max(16 << 20, _footprint_bytes(bt, **fp_kw) + (8 << 20))))

    kernel = functools.partial(_perceiver_attention_kernel, heads=heads,
                               dim_head=dim_head, col_chunk=col_chunk,
                               compute_dtype=compute_dtype)

    def build(single_buffer_weights):
        def wspec(shape):
            idx = lambda i: (0,) * len(shape)
            if single_buffer_weights:
                # Constant-index weights: one resident copy, no double-buffering.
                return pl.BlockSpec(shape, idx, pipeline_mode=pl.Buffered(1))
            return pl.BlockSpec(shape, idx)

        return pl.pallas_call(
            kernel,
            out_shape=jax.ShapeDtypeStruct((B, n2, dim), out_dtype),
            grid_spec=pltpu.PrefetchScalarGridSpec(
                num_scalar_prefetch=0,
                grid=grid,
                in_specs=[
                    pl.BlockSpec((bt, n1, dim), lambda i: (i, 0, 0)),  # x
                    pl.BlockSpec((bt, n2, dim), lambda i: (i, 0, 0)),  # latents
                    wspec((dim, inner2)),                              # Wq (padded, folded)
                    wspec((1, inner2)),                                # q bias
                    wspec((dim, inner2)),                              # Wkv for x path
                    wspec((1, inner2)),                                # kv_x bias
                    wspec((dim, inner2)),                              # Wkv for latent path
                    wspec((1, inner2)),                                # kv_l bias
                    wspec((inner2, dim)),                              # Wo (packed rows)
                ],
                out_specs=pl.BlockSpec((bt, n2, dim), lambda i: (i, 0, 0)),
            ),
            compiler_params=pltpu.CompilerParams(
                dimension_semantics=("parallel",),
                vmem_limit_bytes=vmem_limit),
        )(x_c, lat_c, prepared['wq'], prepared['bq'], prepared['wkv_x'],
          prepared['bkv_x'], prepared['wkv_l'], prepared['bkv_l'], prepared['wo'])

    if hasattr(pl, "Buffered"):
        try:
            return build(True)
        except (TypeError, ValueError, NotImplementedError, pltpu.LoweringException):
            # Fall back only when the single-buffer pipeline_mode is rejected;
            # unrelated errors propagate.
            return build(False)
    return build(False)


def _reference(x, latents, params, *, heads, dim_head):
    """Pure-JAX f32 reference mirroring the PyTorch forward exactly."""
    def ln(v, g, b):
        mu = jnp.mean(v, axis=-1, keepdims=True)
        var = jnp.mean(jnp.square(v - mu), axis=-1, keepdims=True)
        return (v - mu) * jax.lax.rsqrt(var + 1e-5) * g + b

    inner = heads * dim_head
    xn = ln(x, params['norm1_gamma'], params['norm1_beta'])
    latn = ln(latents, params['norm2_gamma'], params['norm2_beta'])
    b, n2, _ = latents.shape
    q = latn @ params['to_q_w'].T
    kv_in = jnp.concatenate([xn, latn], axis=1)
    kv = kv_in @ params['to_kv_w'].T
    k, v = kv[..., :inner], kv[..., inner:]

    def split_heads(t):
        return t.reshape(b, t.shape[1], heads, dim_head).transpose(0, 2, 1, 3)

    q, k, v = split_heads(q), split_heads(k), split_heads(v)
    scale = 1.0 / math.sqrt(math.sqrt(dim_head))
    w = (q * scale) @ jnp.swapaxes(k * scale, -1, -2)
    w = jax.nn.softmax(w.astype(jnp.float32), axis=-1)
    out = w @ v
    out = out.transpose(0, 2, 1, 3).reshape(b, n2, inner)
    return out @ params['to_out_w'].T


if __name__ == "__main__":
    # Small synthetic configuration consistent with the module's forward
    # (x and latents share the feature dim because kv = concat along seq).
    B, n1, n2 = 2, 16, 8
    dim = 32
    heads, dim_head = 4, 8
    inner = heads * dim_head

    key = jax.random.PRNGKey(0)
    ks = jax.random.split(key, 8)

    x = jax.random.normal(ks[0], (B, n1, dim), dtype=jnp.float32)
    latents = jax.random.normal(ks[1], (B, n2, dim), dtype=jnp.float32)

    params = {
        'norm1_gamma': 1.0 + 0.1 * jax.random.normal(ks[2], (dim,), jnp.float32),
        'norm1_beta': 0.1 * jax.random.normal(ks[3], (dim,), jnp.float32),
        'norm2_gamma': 1.0 + 0.1 * jax.random.normal(ks[4], (dim,), jnp.float32),
        'norm2_beta': 0.1 * jax.random.normal(ks[5], (dim,), jnp.float32),
        # nn.Linear weights are (out_features, in_features)
        'to_q_w': 0.2 * jax.random.normal(ks[6], (inner, dim), jnp.float32),
        'to_kv_w': 0.2 * jax.random.normal(ks[7], (2 * inner, dim), jnp.float32),
        'to_out_w': 0.2 * jax.random.normal(jax.random.fold_in(key, 99), (dim, inner), jnp.float32),
    }

    prepared = prepare_params(params, heads=heads, dim_head=dim_head)

    out = perceiver_attention(x, latents, prepared, heads=heads, dim_head=dim_head)
    out = jax.block_until_ready(out)

    ref = jax.block_until_ready(
        _reference(x, latents, params, heads=heads, dim_head=dim_head))

    assert out.shape == (B, n2, dim)
    # bf16 matmul inputs + folded affine + approx softmax reciprocal -> loose tol.
    np.testing.assert_allclose(np.asarray(out), np.asarray(ref), rtol=4e-2, atol=4e-2)

    print("KERNEL_OK")
</pallas_src>

<mosaic_0001>
module attributes {stable_mosaic.version = 11 : i64} {
  func.func @_perceiver_attention_kernel(%arg0: i32, %arg1: memref<1x16x32xbf16, #tpu.memory_space<vmem>>, %arg2: memref<1x8x32xbf16, #tpu.memory_space<vmem>>, %arg3: memref<32x64xbf16, #tpu.memory_space<vmem>>, %arg4: memref<1x64xf32, #tpu.memory_space<vmem>>, %arg5: memref<32x64xbf16, #tpu.memory_space<vmem>>, %arg6: memref<1x64xf32, #tpu.memory_space<vmem>>, %arg7: memref<32x64xbf16, #tpu.memory_space<vmem>>, %arg8: memref<1x64xf32, #tpu.memory_space<vmem>>, %arg9: memref<64x32xbf16, #tpu.memory_space<vmem>>, %arg10: memref<1x8x32xf32, #tpu.memory_space<vmem>>) attributes {dimension_semantics = [#tpu.dimension_semantics<parallel>], iteration_bounds = array<i64: 2>, scalar_prefetch = 0 : i64, scratch_operands = 0 : i64, tpu.core_type = #tpu.core_type<tc>, window_params = [{transform_indices = @transform_0, window_bounds = array<i64: 1, 16, 32>}, {transform_indices = @transform_1, window_bounds = array<i64: 1, 8, 32>}, {pipeline_mode = #tpu.pipeline_mode<synchronous>, transform_indices = @transform_2, window_bounds = array<i64: 32, 64>}, {pipeline_mode = #tpu.pipeline_mode<synchronous>, transform_indices = @transform_3, window_bounds = array<i64: 1, 64>}, {pipeline_mode = #tpu.pipeline_mode<synchronous>, transform_indices = @transform_4, window_bounds = array<i64: 32, 64>}, {pipeline_mode = #tpu.pipeline_mode<synchronous>, transform_indices = @transform_5, window_bounds = array<i64: 1, 64>}, {pipeline_mode = #tpu.pipeline_mode<synchronous>, transform_indices = @transform_6, window_bounds = array<i64: 32, 64>}, {pipeline_mode = #tpu.pipeline_mode<synchronous>, transform_indices = @transform_7, window_bounds = array<i64: 1, 64>}, {pipeline_mode = #tpu.pipeline_mode<synchronous>, transform_indices = @transform_8, window_bounds = array<i64: 64, 32>}, {transform_indices = @transform_9, window_bounds = array<i64: 1, 8, 32>}]} {
    %c0 = arith.constant 0 : index
    %c0_0 = arith.constant 0 : index
    %c0_1 = arith.constant 0 : index
    %0 = vector.load %arg1[%c0, %c0_0, %c0_1] : memref<1x16x32xbf16, #tpu.memory_space<vmem>>, vector<1x16x32xbf16>
    %1 = arith.extf %0 : vector<1x16x32xbf16> to vector<1x16x32xf32>
    %cst = arith.constant dense<0.000000e+00> : vector<1x16xf32>
    %2 = vector.multi_reduction <add>, %1, %cst [2] : vector<1x16x32xf32> to vector<1x16xf32>
    %3 = vector.shape_cast %2 : vector<1x16xf32> to vector<1x16x1xf32>
    %cst_2 = arith.constant 3.200000e+01 : f32
    %4 = vector.broadcast %cst_2 : f32 to vector<1x16x1xf32>
    %5 = arith.divf %3, %4 : vector<1x16x1xf32>
    %6 = vector.broadcast %5 : vector<1x16x1xf32> to vector<1x16x32xf32>
    %7 = arith.subf %1, %6 : vector<1x16x32xf32>
    %8 = arith.mulf %7, %7 : vector<1x16x32xf32>
    %cst_3 = arith.constant dense<0.000000e+00> : vector<1x16xf32>
    %9 = vector.multi_reduction <add>, %8, %cst_3 [2] : vector<1x16x32xf32> to vector<1x16xf32>
    %10 = vector.shape_cast %9 : vector<1x16xf32> to vector<1x16x1xf32>
    %cst_4 = arith.constant 3.200000e+01 : f32
    %11 = vector.broadcast %cst_4 : f32 to vector<1x16x1xf32>
    %12 = arith.divf %10, %11 : vector<1x16x1xf32>
    %13 = vector.broadcast %5 : vector<1x16x1xf32> to vector<1x16x32xf32>
    %14 = arith.subf %1, %13 : vector<1x16x32xf32>
    %cst_5 = arith.constant 9.99999974E-6 : f32
    %15 = vector.broadcast %cst_5 : f32 to vector<1x16x1xf32>
    %16 = arith.addf %12, %15 : vector<1x16x1xf32>
    %17 = math.rsqrt %16 : vector<1x16x1xf32>
    %18 = vector.broadcast %17 : vector<1x16x1xf32> to vector<1x16x32xf32>
    %19 = arith.mulf %14, %18 : vector<1x16x32xf32>
    %20 = arith.truncf %19 : vector<1x16x32xf32> to vector<1x16x32xbf16>
    %c0_6 = arith.constant 0 : index
    %c0_7 = arith.constant 0 : index
    %c0_8 = arith.constant 0 : index
    %21 = vector.load %arg2[%c0_6, %c0_7, %c0_8] : memref<1x8x32xbf16, #tpu.memory_space<vmem>>, vector<1x8x32xbf16>
    %22 = arith.extf %21 : vector<1x8x32xbf16> to vector<1x8x32xf32>
    %cst_9 = arith.constant dense<0.000000e+00> : vector<1x8xf32>
    %23 = vector.multi_reduction <add>, %22, %cst_9 [2] : vector<1x8x32xf32> to vector<1x8xf32>
    %24 = vector.shape_cast %23 : vector<1x8xf32> to vector<1x8x1xf32>
    %cst_10 = arith.constant 3.200000e+01 : f32
    %25 = vector.broadcast %cst_10 : f32 to vector<1x8x1xf32>
    %26 = arith.divf %24, %25 : vector<1x8x1xf32>
    %27 = vector.broadcast %26 : vector<1x8x1xf32> to vector<1x8x32xf32>
    %28 = arith.subf %22, %27 : vector<1x8x32xf32>
    %29 = arith.mulf %28, %28 : vector<1x8x32xf32>
    %cst_11 = arith.constant dense<0.000000e+00> : vector<1x8xf32>
    %30 = vector.multi_reduction <add>, %29, %cst_11 [2] : vector<1x8x32xf32> to vector<1x8xf32>
    %31 = vector.shape_cast %30 : vector<1x8xf32> to vector<1x8x1xf32>
    %cst_12 = arith.constant 3.200000e+01 : f32
    %32 = vector.broadcast %cst_12 : f32 to vector<1x8x1xf32>
    %33 = arith.divf %31, %32 : vector<1x8x1xf32>
    %34 = vector.broadcast %26 : vector<1x8x1xf32> to vector<1x8x32xf32>
    %35 = arith.subf %22, %34 : vector<1x8x32xf32>
    %cst_13 = arith.constant 9.99999974E-6 : f32
    %36 = vector.broadcast %cst_13 : f32 to vector<1x8x1xf32>
    %37 = arith.addf %33, %36 : vector<1x8x1xf32>
    %38 = math.rsqrt %37 : vector<1x8x1xf32>
    %39 = vector.broadcast %38 : vector<1x8x1xf32> to vector<1x8x32xf32>
    %40 = arith.mulf %35, %39 : vector<1x8x32xf32>
    %41 = arith.truncf %40 : vector<1x8x32xf32> to vector<1x8x32xbf16>
    %42 = vector.shape_cast %20 : vector<1x16x32xbf16> to vector<16x32xbf16>
    %43 = vector.shape_cast %41 : vector<1x8x32xbf16> to vector<8x32xbf16>
    %c0_14 = arith.constant 0 : index
    %c0_15 = arith.constant 0 : index
    %44 = vector.load %arg3[%c0_14, %c0_15] : memref<32x64xbf16, #tpu.memory_space<vmem>>, vector<32x64xbf16>
    %cst_16 = arith.constant dense<0.000000e+00> : vector<8x64xf32>
    %45 = tpu.matmul %43, %44, %cst_16 {dimension_numbers = #tpu.dot_dimension_numbers<[1], [0], [0], [1], [0, 0, 1, 1], [], []>} : vector<8x32xbf16>, vector<32x64xbf16>, vector<8x64xf32> -> vector<8x64xf32>
    %c0_17 = arith.constant 0 : index
    %c0_18 = arith.constant 0 : index
    %46 = vector.load %arg4[%c0_17, %c0_18] : memref<1x64xf32, #tpu.memory_space<vmem>>, vector<1x64xf32>
    %47 = vector.broadcast %46 : vector<1x64xf32> to vector<8x64xf32>
    %48 = arith.addf %45, %47 : vector<8x64xf32>
    %49 = arith.truncf %48 : vector<8x64xf32> to vector<8x64xbf16>
    %c0_19 = arith.constant 0 : index
    %c0_20 = arith.constant 0 : index
    %50 = vector.load %arg7[%c0_19, %c0_20] : memref<32x64xbf16, #tpu.memory_space<vmem>>, vector<32x64xbf16>
    %cst_21 = arith.constant dense<0.000000e+00> : vector<8x64xf32>
    %51 = tpu.matmul %43, %50, %cst_21 {dimension_numbers = #tpu.dot_dimension_numbers<[1], [0], [0], [1], [0, 0, 1, 1], [], []>} : vector<8x32xbf16>, vector<32x64xbf16>, vector<8x64xf32> -> vector<8x64xf32>
    %c0_22 = arith.constant 0 : index
    %c0_23 = arith.constant 0 : index
    %52 = vector.load %arg8[%c0_22, %c0_23] : memref<1x64xf32, #tpu.memory_space<vmem>>, vector<1x64xf32>
    %53 = vector.broadcast %52 : vector<1x64xf32> to vector<8x64xf32>
    %54 = arith.addf %51, %53 : vector<8x64xf32>
    %55 = arith.truncf %54 : vector<8x64xf32> to vector<8x64xbf16>
    %c0_24 = arith.constant 0 : index
    %c0_25 = arith.constant 0 : index
    %56 = vector.load %arg5[%c0_24, %c0_25] : memref<32x64xbf16, #tpu.memory_space<vmem>>, vector<32x64xbf16>
    %cst_26 = arith.constant dense<0.000000e+00> : vector<16x64xf32>
    %57 = tpu.matmul %42, %56, %cst_26 {dimension_numbers = #tpu.dot_dimension_numbers<[1], [0], [0], [1], [0, 0, 1, 1], [], []>} : vector<16x32xbf16>, vector<32x64xbf16>, vector<16x64xf32> -> vector<16x64xf32>
    %c0_27 = arith.constant 0 : index
    %c0_28 = arith.constant 0 : index
    %58 = vector.load %arg6[%c0_27, %c0_28] : memref<1x64xf32, #tpu.memory_space<vmem>>, vector<1x64xf32>
    %59 = vector.broadcast %58 : vector<1x64xf32> to vector<16x64xf32>
    %60 = arith.addf %57, %59 : vector<16x64xf32>
    %61 = arith.truncf %60 : vector<16x64xf32> to vector<16x64xbf16>
    %62 = vector.shape_cast %61 : vector<16x64xbf16> to vector<1x16x64xbf16>
    %63 = vector.shape_cast %55 : vector<8x64xbf16> to vector<1x8x64xbf16>
    %64 = vector.shape_cast %49 : vector<8x64xbf16> to vector<1x8x64xbf16>
    %65 = vector.extract_strided_slice %64 {offsets = [0, 0, 0], sizes = [1, 8, 16], strides = [1, 1, 1]} : vector<1x8x64xbf16> to vector<1x8x16xbf16>
    %66 = vector.extract_strided_slice %62 {offsets = [0, 0, 0], sizes = [1, 16, 16], strides = [1, 1, 1]} : vector<1x16x64xbf16> to vector<1x16x16xbf16>
    %67 = vector.extract_strided_slice %63 {offsets = [0, 0, 0], sizes = [1, 8, 16], strides = [1, 1, 1]} : vector<1x8x64xbf16> to vector<1x8x16xbf16>
    %68 = tpu.concatenate %66, %67 in 1 : vector<1x16x16xbf16>, vector<1x8x16xbf16> -> vector<1x24x16xbf16>
    "tpu.trace_start"() <{level = 10 : i32, message = "bqd,bkd->bqk"}> : () -> ()
    %cst_29 = arith.constant dense<0.000000e+00> : vector<1x8x24xf32>
    %69 = tpu.matmul %65, %68, %cst_29 {dimension_numbers = #tpu.dot_dimension_numbers<[2], [2], [1], [1], [0, 0, 0, 1, 1, 1], [0], [0]>} : vector<1x8x16xbf16>, vector<1x24x16xbf16>, vector<1x8x24xf32> -> vector<1x8x24xf32>
    "tpu.trace_stop"() : () -> ()
    %cst_30 = arith.constant dense<0xFF800000> : vector<1x8xf32>
    %70 = vector.multi_reduction <maximumf>, %69, %cst_30 [2] : vector<1x8x24xf32> to vector<1x8xf32>
    %71 = vector.shape_cast %70 : vector<1x8xf32> to vector<1x8x1xf32>
    %72 = vector.broadcast %71 : vector<1x8x1xf32> to vector<1x8x24xf32>
    %73 = arith.subf %69, %72 : vector<1x8x24xf32>
    %74 = math.exp %73 : vector<1x8x24xf32>
    %cst_31 = arith.constant dense<0.000000e+00> : vector<1x8xf32>
    %75 = vector.multi_reduction <add>, %74, %cst_31 [2] : vector<1x8x24xf32> to vector<1x8xf32>
    %76 = vector.shape_cast %75 : vector<1x8xf32> to vector<1x8x1xf32>
    %77 = tpu.reciprocal %76 {approx = true} : vector<1x8x1xf32> -> vector<1x8x1xf32>
    %78 = vector.broadcast %77 : vector<1x8x1xf32> to vector<1x8x24xf32>
    %79 = arith.mulf %74, %78 : vector<1x8x24xf32>
    %80 = arith.truncf %79 : vector<1x8x24xf32> to vector<1x8x24xbf16>
    "tpu.trace_start"() <{level = 10 : i32, message = "bqk,bkd->bqd"}> : () -> ()
    %cst_32 = arith.constant dense<0.000000e+00> : vector<1x8x16xf32>
    %81 = tpu.matmul %80, %68, %cst_32 {dimension_numbers = #tpu.dot_dimension_numbers<[2], [1], [1], [2], [0, 0, 0, 1, 1, 2], [0], [0]>} : vector<1x8x24xbf16>, vector<1x24x16xbf16>, vector<1x8x16xf32> -> vector<1x8x16xf32>
    "tpu.trace_stop"() : () -> ()
    %82 = arith.truncf %81 : vector<1x8x16xf32> to vector<1x8x16xbf16>
    %83 = vector.extract_strided_slice %64 {offsets = [0, 0, 16], sizes = [1, 8, 16], strides = [1, 1, 1]} : vector<1x8x64xbf16> to vector<1x8x16xbf16>
    %84 = vector.extract_strided_slice %62 {offsets = [0, 0, 16], sizes = [1, 16, 16], strides = [1, 1, 1]} : vector<1x16x64xbf16> to vector<1x16x16xbf16>
    %85 = vector.extract_strided_slice %63 {offsets = [0, 0, 16], sizes = [1, 8, 16], strides = [1, 1, 1]} : vector<1x8x64xbf16> to vector<1x8x16xbf16>
    %86 = tpu.concatenate %84, %85 in 1 : vector<1x16x16xbf16>, vector<1x8x16xbf16> -> vector<1x24x16xbf16>
    "tpu.trace_start"() <{level = 10 : i32, message = "bqd,bkd->bqk"}> : () -> ()
    %cst_33 = arith.constant dense<0.000000e+00> : vector<1x8x24xf32>
    %87 = tpu.matmul %83, %86, %cst_33 {dimension_numbers = #tpu.dot_dimension_numbers<[2], [2], [1], [1], [0, 0, 0, 1, 1, 1], [0], [0]>} : vector<1x8x16xbf16>, vector<1x24x16xbf16>, vector<1x8x24xf32> -> vector<1x8x24xf32>
    "tpu.trace_stop"() : () -> ()
    %cst_34 = arith.constant dense<0xFF800000> : vector<1x8xf32>
    %88 = vector.multi_reduction <maximumf>, %87, %cst_34 [2] : vector<1x8x24xf32> to vector<1x8xf32>
    %89 = vector.shape_cast %88 : vector<1x8xf32> to vector<1x8x1xf32>
    %90 = vector.broadcast %89 : vector<1x8x1xf32> to vector<1x8x24xf32>
    %91 = arith.subf %87, %90 : vector<1x8x24xf32>
    %92 = math.exp %91 : vector<1x8x24xf32>
    %cst_35 = arith.constant dense<0.000000e+00> : vector<1x8xf32>
    %93 = vector.multi_reduction <add>, %92, %cst_35 [2] : vector<1x8x24xf32> to vector<1x8xf32>
    %94 = vector.shape_cast %93 : vector<1x8xf32> to vector<1x8x1xf32>
    %95 = tpu.reciprocal %94 {approx = true} : vector<1x8x1xf32> -> vector<1x8x1xf32>
    %96 = vector.broadcast %95 : vector<1x8x1xf32> to vector<1x8x24xf32>
    %97 = arith.mulf %92, %96 : vector<1x8x24xf32>
    %98 = arith.truncf %97 : vector<1x8x24xf32> to vector<1x8x24xbf16>
    "tpu.trace_start"() <{level = 10 : i32, message = "bqk,bkd->bqd"}> : () -> ()
    %cst_36 = arith.constant dense<0.000000e+00> : vector<1x8x16xf32>
    %99 = tpu.matmul %98, %86, %cst_36 {dimension_numbers = #tpu.dot_dimension_numbers<[2], [1], [1], [2], [0, 0, 0, 1, 1, 2], [0], [0]>} : vector<1x8x24xbf16>, vector<1x24x16xbf16>, vector<1x8x16xf32> -> vector<1x8x16xf32>
    "tpu.trace_stop"() : () -> ()
    %100 = arith.truncf %99 : vector<1x8x16xf32> to vector<1x8x16xbf16>
    %101 = vector.extract_strided_slice %64 {offsets = [0, 0, 32], sizes = [1, 8, 16], strides = [1, 1, 1]} : vector<1x8x64xbf16> to vector<1x8x16xbf16>
    %102 = vector.extract_strided_slice %62 {offsets = [0, 0, 32], sizes = [1, 16, 16], strides = [1, 1, 1]} : vector<1x16x64xbf16> to vector<1x16x16xbf16>
    %103 = vector.extract_strided_slice %63 {offsets = [0, 0, 32], sizes = [1, 8, 16], strides = [1, 1, 1]} : vector<1x8x64xbf16> to vector<1x8x16xbf16>
    %104 = tpu.concatenate %102, %103 in 1 : vector<1x16x16xbf16>, vector<1x8x16xbf16> -> vector<1x24x16xbf16>
    "tpu.trace_start"() <{level = 10 : i32, message = "bqd,bkd->bqk"}> : () -> ()
    %cst_37 = arith.constant dense<0.000000e+00> : vector<1x8x24xf32>
    %105 = tpu.matmul %101, %104, %cst_37 {dimension_numbers = #tpu.dot_dimension_numbers<[2], [2], [1], [1], [0, 0, 0, 1, 1, 1], [0], [0]>} : vector<1x8x16xbf16>, vector<1x24x16xbf16>, vector<1x8x24xf32> -> vector<1x8x24xf32>
    "tpu.trace_stop"() : () -> ()
    %cst_38 = arith.constant dense<0xFF800000> : vector<1x8xf32>
    %106 = vector.multi_reduction <maximumf>, %105, %cst_38 [2] : vector<1x8x24xf32> to vector<1x8xf32>
    %107 = vector.shape_cast %106 : vector<1x8xf32> to vector<1x8x1xf32>
    %108 = vector.broadcast %107 : vector<1x8x1xf32> to vector<1x8x24xf32>
    %109 = arith.subf %105, %108 : vector<1x8x24xf32>
    %110 = math.exp %109 : vector<1x8x24xf32>
    %cst_39 = arith.constant dense<0.000000e+00> : vector<1x8xf32>
    %111 = vector.multi_reduction <add>, %110, %cst_39 [2] : vector<1x8x24xf32> to vector<1x8xf32>
    %112 = vector.shape_cast %111 : vector<1x8xf32> to vector<1x8x1xf32>
    %113 = tpu.reciprocal %112 {approx = true} : vector<1x8x1xf32> -> vector<1x8x1xf32>
    %114 = vector.broadcast %113 : vector<1x8x1xf32> to vector<1x8x24xf32>
    %115 = arith.mulf %110, %114 : vector<1x8x24xf32>
    %116 = arith.truncf %115 : vector<1x8x24xf32> to vector<1x8x24xbf16>
    "tpu.trace_start"() <{level = 10 : i32, message = "bqk,bkd->bqd"}> : () -> ()
    %cst_40 = arith.constant dense<0.000000e+00> : vector<1x8x16xf32>
    %117 = tpu.matmul %116, %104, %cst_40 {dimension_numbers = #tpu.dot_dimension_numbers<[2], [1], [1], [2], [0, 0, 0, 1, 1, 2], [0], [0]>} : vector<1x8x24xbf16>, vector<1x24x16xbf16>, vector<1x8x16xf32> -> vector<1x8x16xf32>
    "tpu.trace_stop"() : () -> ()
    %118 = arith.truncf %117 : vector<1x8x16xf32> to vector<1x8x16xbf16>
    %119 = vector.extract_strided_slice %64 {offsets = [0, 0, 48], sizes = [1, 8, 16], strides = [1, 1, 1]} : vector<1x8x64xbf16> to vector<1x8x16xbf16>
    %120 = vector.extract_strided_slice %62 {offsets = [0, 0, 48], sizes = [1, 16, 16], strides = [1, 1, 1]} : vector<1x16x64xbf16> to vector<1x16x16xbf16>
    %121 = vector.extract_strided_slice %63 {offsets = [0, 0, 48], sizes = [1, 8, 16], strides = [1, 1, 1]} : vector<1x8x64xbf16> to vector<1x8x16xbf16>
    %122 = tpu.concatenate %120, %121 in 1 : vector<1x16x16xbf16>, vector<1x8x16xbf16> -> vector<1x24x16xbf16>
    "tpu.trace_start"() <{level = 10 : i32, message = "bqd,bkd->bqk"}> : () -> ()
    %cst_41 = arith.constant dense<0.000000e+00> : vector<1x8x24xf32>
    %123 = tpu.matmul %119, %122, %cst_41 {dimension_numbers = #tpu.dot_dimension_numbers<[2], [2], [1], [1], [0, 0, 0, 1, 1, 1], [0], [0]>} : vector<1x8x16xbf16>, vector<1x24x16xbf16>, vector<1x8x24xf32> -> vector<1x8x24xf32>
    "tpu.trace_stop"() : () -> ()
    %cst_42 = arith.constant dense<0xFF800000> : vector<1x8xf32>
    %124 = vector.multi_reduction <maximumf>, %123, %cst_42 [2] : vector<1x8x24xf32> to vector<1x8xf32>
    %125 = vector.shape_cast %124 : vector<1x8xf32> to vector<1x8x1xf32>
    %126 = vector.broadcast %125 : vector<1x8x1xf32> to vector<1x8x24xf32>
    %127 = arith.subf %123, %126 : vector<1x8x24xf32>
    %128 = math.exp %127 : vector<1x8x24xf32>
    %cst_43 = arith.constant dense<0.000000e+00> : vector<1x8xf32>
    %129 = vector.multi_reduction <add>, %128, %cst_43 [2] : vector<1x8x24xf32> to vector<1x8xf32>
    %130 = vector.shape_cast %129 : vector<1x8xf32> to vector<1x8x1xf32>
    %131 = tpu.reciprocal %130 {approx = true} : vector<1x8x1xf32> -> vector<1x8x1xf32>
    %132 = vector.broadcast %131 : vector<1x8x1xf32> to vector<1x8x24xf32>
    %133 = arith.mulf %128, %132 : vector<1x8x24xf32>
    %134 = arith.truncf %133 : vector<1x8x24xf32> to vector<1x8x24xbf16>
    "tpu.trace_start"() <{level = 10 : i32, message = "bqk,bkd->bqd"}> : () -> ()
    %cst_44 = arith.constant dense<0.000000e+00> : vector<1x8x16xf32>
    %135 = tpu.matmul %134, %122, %cst_44 {dimension_numbers = #tpu.dot_dimension_numbers<[2], [1], [1], [2], [0, 0, 0, 1, 1, 2], [0], [0]>} : vector<1x8x24xbf16>, vector<1x24x16xbf16>, vector<1x8x16xf32> -> vector<1x8x16xf32>
    "tpu.trace_stop"() : () -> ()
    %136 = arith.truncf %135 : vector<1x8x16xf32> to vector<1x8x16xbf16>
    %137 = tpu.concatenate %82, %100, %118, %136 in 2 : vector<1x8x16xbf16>, vector<1x8x16xbf16>, vector<1x8x16xbf16>, vector<1x8x16xbf16> -> vector<1x8x64xbf16>
    %138 = vector.shape_cast %137 : vector<1x8x64xbf16> to vector<8x64xbf16>
    %c0_45 = arith.constant 0 : index
    %c0_46 = arith.constant 0 : index
    %139 = vector.load %arg9[%c0_45, %c0_46] : memref<64x32xbf16, #tpu.memory_space<vmem>>, vector<64x32xbf16>
    %cst_47 = arith.constant dense<0.000000e+00> : vector<8x32xf32>
    %140 = tpu.matmul %138, %139, %cst_47 {dimension_numbers = #tpu.dot_dimension_numbers<[1], [0], [0], [1], [0, 0, 1, 1], [], []>} : vector<8x64xbf16>, vector<64x32xbf16>, vector<8x32xf32> -> vector<8x32xf32>
    %141 = vector.shape_cast %140 : vector<8x32xf32> to vector<1x8x32xf32>
    %c0_48 = arith.constant 0 : index
    %c0_49 = arith.constant 0 : index
    %c0_50 = arith.constant 0 : index
    %142 = vector.load %arg10[%c0_48, %c0_49, %c0_50] : memref<1x8x32xf32, #tpu.memory_space<vmem>>, vector<1x8x32xf32>
    tpu.vector_store %arg10[%c0_48, %c0_49, %c0_50], %141 {strides = array<i32>} : memref<1x8x32xf32, #tpu.memory_space<vmem>>, vector<1x8x32xf32>,
    return
  }
  func.func @transform_0(%arg0: i32) -> (i32, i32, i32) {
    %c0_i32 = arith.constant 0 : i32
    %c0_i32_0 = arith.constant 0 : i32
    %c0_i32_1 = arith.constant 0 : i32
    return %arg0, %c0_i32, %c0_i32_0 : i32, i32, i32
  }
  func.func @transform_1(%arg0: i32) -> (i32, i32, i32) {
    %c0_i32 = arith.constant 0 : i32
    %c0_i32_0 = arith.constant 0 : i32
    %c0_i32_1 = arith.constant 0 : i32
    return %arg0, %c0_i32, %c0_i32_0 : i32, i32, i32
  }
  func.func @transform_2(%arg0: i32) -> (i32, i32) {
    %c0_i32 = arith.constant 0 : i32
    %c0_i32_0 = arith.constant 0 : i32
    %c0_i32_1 = arith.constant 0 : i32
    return %c0_i32, %c0_i32_0 : i32, i32
  }
  func.func @transform_3(%arg0: i32) -> (i32, i32) {
    %c0_i32 = arith.constant 0 : i32
    %c0_i32_0 = arith.constant 0 : i32
    %c0_i32_1 = arith.constant 0 : i32
    return %c0_i32, %c0_i32_0 : i32, i32
  }
  func.func @transform_4(%arg0: i32) -> (i32, i32) {
    %c0_i32 = arith.constant 0 : i32
    %c0_i32_0 = arith.constant 0 : i32
    %c0_i32_1 = arith.constant 0 : i32
    return %c0_i32, %c0_i32_0 : i32, i32
  }
  func.func @transform_5(%arg0: i32) -> (i32, i32) {
    %c0_i32 = arith.constant 0 : i32
    %c0_i32_0 = arith.constant 0 : i32
    %c0_i32_1 = arith.constant 0 : i32
    return %c0_i32, %c0_i32_0 : i32, i32
  }
  func.func @transform_6(%arg0: i32) -> (i32, i32) {
    %c0_i32 = arith.constant 0 : i32
    %c0_i32_0 = arith.constant 0 : i32
    %c0_i32_1 = arith.constant 0 : i32
    return %c0_i32, %c0_i32_0 : i32, i32
  }
  func.func @transform_7(%arg0: i32) -> (i32, i32) {
    %c0_i32 = arith.constant 0 : i32
    %c0_i32_0 = arith.constant 0 : i32
    %c0_i32_1 = arith.constant 0 : i32
    return %c0_i32, %c0_i32_0 : i32, i32
  }
  func.func @transform_8(%arg0: i32) -> (i32, i32) {
    %c0_i32 = arith.constant 0 : i32
    %c0_i32_0 = arith.constant 0 : i32
    %c0_i32_1 = arith.constant 0 : i32
    return %c0_i32, %c0_i32_0 : i32, i32
  }
  func.func @transform_9(%arg0: i32) -> (i32, i32, i32) {
    %c0_i32 = arith.constant 0 : i32
    %c0_i32_0 = arith.constant 0 : i32
    %c0_i32_1 = arith.constant 0 : i32
    return %arg0, %c0_i32, %c0_i32_0 : i32, i32, i32
  }
}

</mosaic_0001>

<bundles_post_ra>
// kernel: tpu_custom_call.1
= control target key start
LH: loop header
LB: loop body
LE: loop exit
PB: predicated region body
PF: predicated region fallthrough
CT: control target
= control target key end

     0   :  { %s2079_s0 = inlined_call_operand.vmem [shape: bf16[2,16,32], index: 0, kind: input, shape index: {}]   ;;  %s2080_s1 = inlined_call_operand.hbm [shape: bf16[2,8,32], index: 1, kind: input, shape index: {}]   ;;  %s2081_s2 = inlined_call_operand.vmem [shape: bf16[32,64], index: 2, kind: input, shape index: {}]   ;;  %s2082_s3 = inlined_call_operand.vmem [shape: f32[1,64], index: 3, kind: input, shape index: {}]   ;;  %s2083_s4 = inlined_call_operand.vmem [shape: bf16[32,64], index: 4, kind: input, shape index: {}]   ;;  %s2084_s5 = inlined_call_operand.vmem [shape: f32[1,64], index: 5, kind: input, shape index: {}]   ;;  %s2085_s6 = inlined_call_operand.hbm [shape: bf16[32,64], index: 6, kind: input, shape index: {}]   ;;  %s2086_s7 = inlined_call_operand.vmem [shape: f32[1,64], index: 7, kind: input, shape index: {}]   ;;  %s2087_s8 = inlined_call_operand.vmem [shape: bf16[64,32], index: 8, kind: input, shape index: {}]   ;;  %s2088_s9 = inlined_call_operand.hbm [shape: f32[2,8,32], index: 9, kind: output, shape index: {}]  }
   0x1   :  { %2096 = sst [smem:[#allocation14_spill]] %s2085_s6 }
   0x2   :  { %14 = vsyncpa [#allocation3], 0 }
   0x3   :  { %16 = vsyncpa [#allocation3 + $0x1], 0 }
   0x4   :  { %17 = vsyncpa [#allocation6], 0 }
   0x5   :  { %18 = vsyncpa [#allocation4], 0 }
   0x6   :  { %20 = vsyncpa [#allocation4 + $0x1], 0  ;;  %s1756_s30 = smov 0   ;;  %s1758_s10 = smov 0  }
   0x7   :  { %s1760_s11 = smov 0   ;;  %s1762_s12 = smov 0  }
   0x8 LB: > { %s1777_s13 = sadd.s32 4294967295, %s1691_s12   ;;  %s1286_s14 = sadd.s32 4294967294, %s1691_s12   ;;  %s1691_s12 = sphi %s1762_s12, %s2116_s12   ;;  %s1687_s11 = sphi %s1760_s11, %s2120_s11   ;;  %s1683_s10 = sphi %s1758_s10, %s2119_s10   ;;  %s1679_s30 = sphi %s1756_s30, %s2118_s30  }
   0x9   : > { %p72_p0 = scmp.ne.s32.totalorder %s1683_s10, %s1679_s30  ;;  %p2092_p1 = scmp.eq.s32.totalorder %s1777_s13, 0 }
   0xa   : > { %p249_p3 = scmp.eq.s32.totalorder %s1286_s14, 1  ;;  %p1287_p5 = scmp.ge.s32.totalorder %s1691_s12, 1 }
   0xb   : > { %p1786_p4 = por %p2092_p1, %p72_p0  ;;  %p256_p7 = scmp.lt.s32.totalorder %s1691_s12, 3 }
   0xc   : > { %p1791_p6 = por %p249_p3, %p72_p0  ;;  %s1693_s18 = smov [#allocation5]  }
   0xd   : > { %s2097_s15 = scalar_select %p1786_p4, 1, 0 }
   0xe   : > { %s2098_s16 = scalar_select %p1791_p6, 1, 0 }
   0xf   : > { %p1796_p8 = pnand %p1287_p5, %p256_p7  ;;  %s280_s19 = sshll.u32 %s1693_s18, 4  ;;  %s281_s19 = int_to_ptr.vmem [resolvable:$true] %s280_s19 }
  0x10   : > { %2099 = sst [smem:[#allocation11_spill]] %s2098_s16  ;;  %s1810_s21 = sadd.s32 1, %s1691_s12  }
  0x11   : > { %s2100_s17 = scalar_select %p1796_p8, 1, 0 }
  0x12   : > { %p1478_p9 = pneg %p1796_p8  ;;  %2102 = sst [smem:[#allocation12_spill]] %s1810_s21 }
  0x13   : > { %s59_s22 = sadd.s32 1, %s1687_s11  ;;  %s56_s23 = ssub.s32 %s1691_s12, %s1810_s21 }
  0x14   : > { %p1805_p11 = pnand %p1478_p9, %p2092_p1  ;;  %s1580_s24 = scalar_lea.vmem %s281_s19, 256 }
  0x15   : > { %p1581_p13 = scmp.ne.s32.totalorder %s281_s19, %s1580_s24  ;;  %p1588_p5 = scmp.lt.s32.totalorder %s281_s19, %s281_s19 }
  0x16   : > { %p1571_p12 = pneg %p1805_p11  ;;  %p1589_p7 = scmp.lt.s32.totalorder %s1580_s24, %s1580_s24 }
  0x18   : > { %p1583_p0 = pnand %p1581_p13, %p1571_p12  ;;  %p1590_p10 = por %p1589_p7, %p1588_p5 }
  0x1a   : > { %p1584_p3 = pneg %p1583_p0 }
  0x1c   : > { %p1591_p2 = pnand %p1590_p10, %p1584_p3 }
  0x1e   : > { %1594 = shalt.err (!%p1591_p2)
}
  0x1f   : > { %s1694_s25 = smov 64   ;;  %s1695_s26 = smov 4  }
  0x20   : > { %s2103_s6 = sld [smem:[#allocation14_spill]]  ;;  %p57_p9 = scmp.eq.s32.totalorder %s56_s23, 0 }
  0x21   : > { %p66_p12 = scmp.ne.s32.totalorder %s1687_s11, %s1683_s10  ;;  %p67_p10 = scmp.eq.s32.totalorder %s1691_s12, 0 }
  0x22   : > { %p1491_p2 = scmp.lt.s32.totalorder %s1691_s12, 2  ;;  %p2105_p0 = scmp.eq.s32.totalorder %s1777_s13, 1 }
  0x23   : > { %s1827_s29 = scalar_select %p57_p9, %s1687_s11, %s59_s22  }
  0x24   : > { %p68_p13 = por %p67_p10, %p66_p12  ;;  %p1831_p3 = por %p2105_p0, %p66_p12 }
  0x25   : > { %2104 = sst [smem:[#allocation13_spill]] %s1827_s29  ;;  %s308_s18 = sand.u32 1, %s1687_s11  }
  0x26   : > { %1481 = dma.hbm_to_vmem [thread:$0]  (!%p1805_p11), %s2103_s6, 256, %s281_s19, [#allocation6], %s1694_s25, %s1694_s25, %s1695_s26  }
  0x27   : > { %s2106_s14 = scalar_select %p1831_p3, 1, 0 }
  0x28   : > { %s1291_s24 = sshll.u32 %s1691_s12, 6  ;;  %s1290_s21 = sshll.u32 %s308_s18, 2 }
  0x29   : > { %s1840_s27 = scalar_lea.hbm %s2080_s1, %s1291_s24  ;;  %s312_s19 = scalar_lea.vmem [#allocation2], %s1290_s21 }
  0x2a   : > { %s319_s22 = sshll.u32 %s312_s19, 4  ;;  %p1842_p11 = pnand %p1491_p2, %p68_p13  ;;  %s320_s22 = int_to_ptr.vmem [resolvable:$true] %s319_s22 }
  0x2b   : > { %s309_s25 = scalar_lea.sflag [#allocation3], %s308_s18  ;;  %s1595_s26 = scalar_lea.hbm %s1840_s27, 64 }
  0x2c   : > { %p1596_p5 = scmp.ne.s32.totalorder %s1840_s27, %s1595_s26  ;;  %p1597_p7 = pneg %p1842_p11 }
  0x2d   : > { %s1600_s24 = scalar_lea.hbm %s2080_s1, 128  ;;  %p1601_p10 = scmp.lt.s32.totalorder %s1840_s27, %s2080_s1 }
  0x2e   : > { %p1598_p9 = pnand %p1597_p7, %p1596_p5  ;;  %p1602_p2 = scmp.lt.s32.totalorder %s1600_s24, %s1595_s26 }
  0x30   : > { %p1599_p12 = pneg %p1598_p9  ;;  %p1603_p13 = por %p1602_p2, %p1601_p10 }
  0x32   : > { %p1604_p0 = pnand %p1603_p13, %p1599_p12 }
  0x34   : > { %1607 = shalt.err (!%p1604_p0)
}
  0x35   : > { %s1608_s19 = scalar_lea.vmem %s320_s22, 64  ;;  %s1696_s18 = smov [#allocation2]  }
  0x36   : > { %p1609_p1 = scmp.ne.s32.totalorder %s320_s22, %s1608_s19  ;;  %s1613_s6 = sshll.u32 %s1696_s18, 4  ;;  %s1614_s6 = int_to_ptr.vmem [resolvable:$false] %s1613_s6 }
  0x37   : > { %s1615_s29 = scalar_lea.vmem %s1614_s6, 128  ;;  %p1616_p5 = scmp.lt.s32.totalorder %s320_s22, %s1614_s6 }
  0x38   : > { %p1611_p6 = pnand %p1609_p1, %p1597_p7  ;;  %p1617_p9 = scmp.lt.s32.totalorder %s1615_s29, %s1608_s19 }
  0x3a   : > { %p1612_p3 = pneg %p1611_p6  ;;  %p1618_p4 = por %p1617_p9, %p1616_p5 }
  0x3c   : > { %p1619_p8 = pnand %p1618_p4, %p1612_p3 }
  0x3e   : > { %1622 = shalt.err (!%p1619_p8)
}
  0x3f   : > { %1485 = dma.hbm_to_vmem [thread:$0]  (!%p1842_p11), %s1840_s27, 64, %s320_s22, %s309_s25  }
  0x40   : > { %p2108_p12 = scmp.ne.s32.totalorder %s2100_s17, 0 }
  0x41   : > { %s1863_s26 = sand.u32 (!%p2108_p12), 1, %s1683_s10   ;;  %p2109_p1 = scmp.ne.s32.totalorder (!%p2108_p12), %s2097_s15, 0 }
  0x42   : > { %328 = sbr.rel (%p2108_p12) target bundleno = 3197 (0xc7d), region = 56  ;;  %s1293_s16 = sshll.u32 (!%p2108_p12), %s1863_s26, 2 }
  0x43   : > { %s331_s28 = scalar_lea.sflag (!%p2108_p12), [#allocation3], %s1863_s26  ;;  %s334_s6 = scalar_lea.vmem (!%p2108_p12), [#allocation2], %s1293_s16 }
  0x47   : > { %1666 = dma.done.wait (%p2109_p1), %s331_s28, 64  }
  0x48   : > { %1668 = vsyncadd (%p2109_p1), %s331_s28, 4294967232  ;;  %p2110_p4 = scmp.eq.s32.totalorder %s1777_s13, 0 }
  0x4a   : > { %1670 = dma.done.wait (%p2110_p4), [#allocation6], 256   ;;  %p2111_p6 = pmov %p2110_p4 }
  0x4b   : > { %p378_p8 = scmp.lt.s32.totalorder %s1777_s13, 1  ;;  %vm388_vm0 = vcmask 261120   ;;  %v417_v0 = vld [vmem:[%s334_s6] sm:$0xf]  ;;  %v1537_v23 = vld [vmem:[%s2081_s2 + $0x8] sm:$0xff]   ;;  %v1538_v24 = vld [vmem:[#allocation5 + $0x8] sm:$0xff]  }
  0x4c   : > { %1672 = vsyncadd (%p2111_p6), [#allocation6], 4294967040  ;;  %v418_v2 = vunpack.c.l.bf16 %v417_v0  ;;  %v1697_v25 = vmov 0.0   ;;  %v1539_v26 = vld [vmem:[%s2081_s2] sm:$0xff]   ;;  %v1540_v27 = vld [vmem:[#allocation5] sm:$0xff]   ;;  %vm1698_vm1 = vmmov 0  }
  0x4d   : > { %s379_s17 = scalar_select %p378_p8, %s1777_s13, 1  ;;  %1370 = vmatprep.subr.bf16.mxu0 %v1697_v25  ;;  %1378 = vmatprep.subr.bf16.mxu1 %v1697_v25  ;;  %v1541_v39 = vld [vmem:[%s2083_s4 + $0x8] sm:$0xff]   ;;  %v1542_v43 = vld [vmem:[%s2083_s4] sm:$0xff]   ;;  %vm632_vm2 = vcmask 130048   ;;  %vm698_vm3 = vcmask 1043456   ;;  %vm682_vm4 = vcmask 195584  }
  0x4e   : > { %v419_v5 = vsel %vm388_vm0, %v418_v2, 0.0  ;;  %1371 = vmatpush3.bf16.msra.mxu0 %v1537_v23  ;;  %1379 = vmatpush3.bf16.msra.mxu1 %v1538_v24  ;;  %v1302_v47 = vld [vmem:[%s2086_s7] ss:$0 sm:$0xff]  ;;  %s1700_s15 = smov 96   ;;  %s1701_s25 = smov 80   ;;  %vm1101_vm5 = vcmask 392192  }
  0x4f   : > { %s1327_s29 = sshll.u32 %s379_s17, 3  ;;  %420 = vadd.xlane.f32.xlu0 %v419_v5  ;;  %1372 = vmatprep.subr.bf16.mxu0 %v1697_v25  ;;  %v1306_v61 = vld [vmem:[%s2084_s5] ss:$0 sm:$0xff]  ;;  %s1702_s24 = smov 32   ;;  %vm1136_vm6 = vcmask 523264  }
  0x50   : > { %s382_s23 = scalar_lea.vmem %s2079_s0, %s1327_s29  ;;  %1380 = vmatprep.subr.bf16.mxu1 %v1697_v25  ;;  %1374 = vmatprep.mubr.msk.bf16.mxu0 %vm1698_vm1, %v1697_v25  ;;  %s1703_s20 = smov 16  }
  0x51   : > { %v1329_v1 = vld [vmem:[%s382_s23] sm:$0xff]   ;;  %1382 = vmatprep.mubr.msk.bf16.mxu1 %vm1698_vm1, %v1697_v25  ;;  %s1699_s23 = smov 112   ;;  %s1704_s27 = smov 48  }
  0x52   : > { %v1331_v3 = vunpack.c.h.bf16 %v1329_v1  ;;  %v1330_v4 = vunpack.c.l.bf16 %v1329_v1  ;;  %1373 = vmatpush3.bf16.msra.mxu0 %v1539_v26  ;;  %1381 = vmatpush3.bf16.msra.mxu1 %v1540_v27  ;;  %s1295_s22 = sshll.u32 %s1863_s26, 3  ;;  %s1181_s19 = scalar_lea.sflag [#allocation4], %s1863_s26 }
  0x53   : > { %1386 = vmatprep.subr.bf16.mxu0 %v1697_v25  ;;  %1394 = vmatprep.subr.bf16.mxu1 %v1697_v25  ;;  %p2112_p11 = scmp.ne.s32.totalorder %s2106_s14, 0 }
  0x54   : > { %v392_v6 = vsel %vm388_vm0, %v1331_v3, 0.0  ;;  %v389_v7 = vsel %vm388_vm0, %v1330_v4, 0.0 }
  0x55   : > { %393 = vadd.xlane.f32.xlu1 %v392_v6  ;;  %390 = vadd.xlane.f32.xlu0 %v389_v7 }
  0xd8   : > { %v421_v8 = vpop.xlane.xlu0 %420 }
  0xd9   : > { %v422_v10 = vmul.f32 0.03125, %v421_v8 }
  0xdb   : > { %v423_v12 = vsub.f32 %v418_v2, %v422_v10 }
  0xdd   : > { %v424_v16 = vmul.f32 %v423_v12, %v423_v12 }
  0xde   : > { %v394_v9 = vpop.xlane.xlu1 %393  ;;  %v391_v14 = vpop.xlane.xlu0 %390 }
  0xdf   : > { %v397_v11 = vmul.f32 0.03125, %v394_v9  ;;  %v396_v15 = vmul.f32 0.03125, %v391_v14  ;;  %v425_v19 = vsel %vm388_vm0, %v424_v16, 0.0 }
  0xe0   : > { %426 = vadd.xlane.f32.xlu1 %v425_v19 }
  0xe1   : > { %v399_v13 = vsub.f32 %v1331_v3, %v397_v11  ;;  %v398_v18 = vsub.f32 %v1330_v4, %v396_v15  ;;  %v1298_v4 = vld [vmem:[%s2082_s3] ss:$0 sm:$0xff] }
  0xe3   : > { %v401_v17 = vmul.f32 %v399_v13, %v399_v13  ;;  %v400_v21 = vmul.f32 %v398_v18, %v398_v18 }
  0xe5   : > { %v405_v20 = vsel %vm388_vm0, %v401_v17, 0.0  ;;  %v402_v22 = vsel %vm388_vm0, %v400_v21, 0.0 }
  0xe6   : > { %406 = vadd.xlane.f32.xlu1 %v405_v20  ;;  %403 = vadd.xlane.f32.xlu0 %v402_v22 }
 0x169   : > { %v427_v28 = vpop.xlane.xlu1 %426 }
 0x16a   : > { %v428_v29 = vmul.f32 0.03125, %v427_v28 }
 0x16c   : > { %v429_v30 = vadd.f32 1e-05, %v428_v29 }
 0x16e   : > { %1547 = vrsqrt.f32 %v429_v30 }
 0x16f   : > { %v407_v31 = vpop.xlane.xlu1 %406  ;;  %v404_v32 = vpop.xlane.xlu0 %403 }
 0x170   : > { %v409_v33 = vmul.f32 0.03125, %v407_v31  ;;  %v408_v34 = vmul.f32 0.03125, %v404_v32 }
 0x172   : > { %v411_v35 = vadd.f32 1e-05, %v409_v33  ;;  %v410_v36 = vadd.f32 1e-05, %v408_v34 }
 0x174   : > { %1549 = vrsqrt.f32 %v411_v35 }
 0x175   : > { %1551 = vrsqrt.f32 %v410_v36 }
 0x17b   : > { %v1548_v37 = vpop.eup %1547 }
 0x17c   : > { %v431_v38 = vmul.f32 %v1548_v37, %v423_v12 }
 0x17e   : > { %v432_v40 = vpack.c.bf16 %v431_v38, %v431_v38 }
 0x180   : > { %1375 = vmatmul.mubr.msk.bf16.vlgmr.msra.gmra.mxu0 %vm388_vm0, %v432_v40  ;;  %1383 = vmatmul.mubr.msk.bf16.vlgmr.msra.gmra.mxu1 %vm388_vm0, %v432_v40 }
 0x181   : > { %v1550_v41 = vpop.eup %1549  ;;  %1387 = vmatpush3.bf16.msra.mxu0 %v1541_v39  ;;  %1390 = vmatprep.mubr.msk.bf16.mxu0 %vm1698_vm1, %v1697_v25 }
 0x182   : > { %v1552_v42 = vpop.eup %1551  ;;  %1388 = vmatprep.subr.bf16.mxu0 %v1697_v25  ;;  %v415_v45 = vmul.f32 %v1550_v41, %v399_v13  ;;  %1398 = vmatprep.mubr.msk.bf16.mxu1 %vm1698_vm1, %v1697_v25 }
 0x183   : > { %v414_v44 = vmul.f32 %v1552_v42, %v398_v18 }
 0x185   : > { %1389 = vmatpush3.bf16.msra.mxu0 %v1542_v43  ;;  %v416_v46 = vpack.c.bf16 %v415_v45, %v414_v44 }
 0x186   : > { %1402 = vmatprep.subr.bf16.mxu0 %v1697_v25 }
 0x188   : > { %1391 = vmatmul.mubr.msk.bf16.vlgmr.msra.gmra.mxu0 %vm388_vm0, %v416_v46 }
 0x189   : > { %1406 = vmatprep.mubr.msk.bf16.mxu0 %vm1698_vm1, %v1697_v25 }
 0x240   : > { %v493_v48 = vpop.f32.mrf.mxu0  ;;  %v557_v49 = vpop.f32.mrf.mxu1 }
 0x241   : > { %v558_v50 = vadd.f32 %v1302_v47, %v557_v49  ;;  %v494_v6 = vadd.f32 %v1298_v4, %v493_v48 }
 0x242   : > { %v1376_v51 = vpop.f32.mrf.mxu0  ;;  %v1384_v52 = vpop.f32.mrf.mxu1 }
 0x243   : > { %v1922_v53 = vpack.c.bf16 %v558_v50, %v558_v50  ;;  %v1943_v7 = vpack.c.bf16 %v494_v6, %v494_v6 }
 0x244   : > { %v496_v54 = vpop.f32.mrf.mxu0  ;;  %v560_v55 = vpop.f32.mrf.mxu1 }
 0x245   : > { %v640_v56 = vsel %vm632_vm2, %v1922_v53, 0  ;;  %v699_v57 = vsel %vm698_vm3, %v1922_v53, 0 }
 0x246   : > { %v1377_v58 = vpop.f32.mrf.mxu0  ;;  %v1385_v59 = vpop.f32.mrf.mxu1  ;;  %1395 = vmatpush3.bf16.xpose.msra.mxu1 %v640_v56  ;;  %1403 = vmatpush3.bf16.msra.mxu0 %v699_v57 }
 0x247   : > { %1404 = vmatprep.subr.bf16.mxu0 %v1697_v25  ;;  %1396 = vmatprep.subr.bf16.mxu1 %v1697_v25 }
 0x248   : > { %v624_v60 = vpop.f32.mrf.mxu0 }
 0x249   : > { %v625_v0 = vadd.f32 %v1306_v61, %v624_v60 }
 0x24a   : > { %v1392_v62 = vpop.f32.mrf.mxu0 }
 0x24c   : > { %v627_v63 = vpop.f32.mrf.mxu0 }
 0x24d   : > { %v628_v1 = vadd.f32 %v1306_v61, %v627_v63 }
 0x24e   : > { %v1393_v2 = vpop.f32.mrf.mxu0 }
 0x24f   : > { %v1933_v3 = vpack.c.bf16 %v628_v1, %v625_v0 }
 0x251   : > { %1405 = vmatpush3.bf16.msra.mxu0 %v1933_v3  ;;  %v637_v5 = vsel %vm632_vm2, %v1933_v3, 0 }
 0x252   : > { %1397 = vmatpush3.bf16.xpose.msra.mxu1 %v637_v5  ;;  %1410 = vmatprep.subr.bf16.mxu0 %v1697_v25 }
 0x253   : > { %1418 = vmatprep.subr.bf16.mxu1 %v1697_v25 }
 0x259   : > { %1399 = vmatmul.mubr.msk.bf16.vlgmr.msra.gmra.mxu1 %vm632_vm2, %v1943_v7 }
 0x25a   : > { %1422 = vmatprep.mubr.msk.bf16.mxu1 %vm1698_vm1, %v1697_v25 }
 0x319   : > { %v676_v8 = vpop.f32.mrf.mxu1 }
 0x31a   : > { %v683_v9 = vsel %vm682_vm4, %v676_v8, -inf }
 0x31b   : > { %684 = vmax.xlane.f32.xlu0 %v683_v9  ;;  %v1400_v10 = vpop.f32.mrf.mxu1 }
 0x31d   : > { %v679_v11 = vpop.f32.mrf.mxu1 }
 0x31f   : > { %v1401_v12 = vpop.f32.mrf.mxu1 }
 0x331   : > { %749 = vrot.lane.b32.xlu0 %v1922_v53, %s1699_s23 }
 0x3a4   : > { %v685_v13 = vpop.xlane.xlu0 %684 }
 0x3a5   : > { %v686_v14 = vsub.f32 %v676_v8, %v685_v13 }
 0x3a7   : > { %v687_v15 = vmul.f32 1.442695, %v686_v14 }
 0x3a8   : > { %v750_v16 = vpop.permute.xlu0 %749 }
 0x3a9   : > { %1553 = vpow2.f32 %v687_v15  ;;  %v816_v17 = vsel %vm698_vm3, %v750_v16, 0  ;;  %v758_v26 = vsel %vm632_vm2, %v750_v16, 0 }
 0x3aa   : > { %1419 = vmatpush3.bf16.msra.mxu1 %v816_v17 }
 0x3ab   : > { %1420 = vmatprep.subr.bf16.mxu1 %v1697_v25 }
 0x3b6   : > { %v1554_v18 = vpop.eup %1553 }
 0x3b7   : > { %v689_v19 = vsel %vm682_vm4, %v1554_v18, 0.0 }
 0x3b8   : > { %690 = vadd.xlane.f32.xlu1 %v689_v19 }
 0x3c9   : > { %747 = vrot.lane.b32.xlu1 %v1933_v3, %s1699_s23 }
 0x3cd   : > { %743 = vrot.lane.b32.xlu1 %v1943_v7, %s1699_s23  ;;  %s1324_s23 = sshll.u32 %s1777_s13, 7  ;;  %s1705_s13 = smov [#allocation7]  }
 0x3ce   : > { %s2035_s21 = scalar_lea.hbm %s2088_s9, %s1324_s23  ;;  %s1627_s16 = sshll.u32 %s1705_s13, 4  ;;  %s1628_s16 = int_to_ptr.vmem [resolvable:$false] %s1627_s16 }
 0x3cf   : > { %s1629_s28 = scalar_lea.vmem %s1628_s16, 256 }
 0x441   : > { %v691_v20 = vpop.xlane.xlu1 %690 }
 0x442   : > { %1555 = vrcp.f32 %v691_v20 }
 0x445   : > { %v748_v21 = vpop.permute.xlu1 %747 }
 0x446   : > { %1421 = vmatpush3.bf16.msra.mxu1 %v748_v21  ;;  %v755_v27 = vsel %vm632_vm2, %v748_v21, 0 }
 0x447   : > { %1426 = vmatprep.subr.bf16.mxu1 %v1697_v25 }
 0x449   : > { %v744_v28 = vpop.permute.xlu1 %743 }
 0x44f   : > { %v1556_v22 = vpop.eup %1555 }
 0x450   : > { %v693_v23 = vmul.f32 %v1556_v22, %v1554_v18 }
 0x452   : > { %v694_v24 = vpack.c.bf16 %v693_v23, %v693_v23 }
 0x454   : > { %1407 = vmatmul.mubr.msk.bf16.vlgmr.msra.gmra.mxu0 %vm682_vm4, %v694_v24 }
 0x455   : > { %1411 = vmatpush3.bf16.xpose.msra.mxu0 %v758_v26  ;;  %1414 = vmatprep.mubr.msk.bf16.mxu0 %vm1698_vm1, %v1697_v25 }
 0x456   : > { %1412 = vmatprep.subr.bf16.mxu0 %v1697_v25 }
 0x45d   : > { %1413 = vmatpush3.bf16.xpose.msra.mxu0 %v755_v27 }
 0x45e   : > { %1434 = vmatprep.subr.bf16.mxu0 %v1697_v25 }
 0x464   : > { %1415 = vmatmul.mubr.msk.bf16.vlgmr.msra.gmra.mxu0 %vm632_vm2, %v744_v28 }
 0x465   : > { %1438 = vmatprep.mubr.msk.bf16.mxu0 %vm1698_vm1, %v1697_v25 }
 0x514   : > { %v1967_v29 = vpop.f32.mrf.mxu0 }
 0x516   : > { %v1408_v30 = vpop.f32.mrf.mxu0 }
 0x518   : > { %v738_v31 = vpop.f32.mrf.mxu0 }
 0x51a   : > { %v1409_v32 = vpop.f32.mrf.mxu0 }
 0x524   : > { %v794_v33 = vpop.f32.mrf.mxu0 }
 0x525   : > { %v800_v34 = vsel %vm682_vm4, %v794_v33, -inf }
 0x526   : > { %801 = vmax.xlane.f32.xlu1 %v800_v34  ;;  %v1416_v35 = vpop.f32.mrf.mxu0 }
 0x527   : > { %v1543_v35 = vld [vmem:[%s2087_s8 + $0x18] sm:$0xff]  }
 0x528   : > { %v797_v36 = vpop.f32.mrf.mxu0 }
 0x529   : > { %v1544_v36 = vld [vmem:[%s2087_s8 + $0x10] sm:$0xff]  }
 0x52a   : > { %v1417_v37 = vpop.f32.mrf.mxu0 }
 0x52b   : > { %v1545_v37 = vld [vmem:[%s2087_s8 + $0x8] sm:$0xff]  }
 0x537   : > { %861 = vrot.lane.b32.xlu1 %v1933_v3, %s1700_s15 }
 0x53b   : > { %859 = vrot.lane.b32.xlu1 %v1943_v7, %s1700_s15 }
 0x5af   : > { %v802_v38 = vpop.xlane.xlu1 %801 }
 0x5b0   : > { %v803_v39 = vsub.f32 %v794_v33, %v802_v38  ;;  %v1546_v38 = vld [vmem:[%s2087_s8] sm:$0xff]  }
 0x5b2   : > { %v804_v40 = vmul.f32 1.442695, %v803_v39 }
 0x5b3   : > { %v862_v46 = vpop.permute.xlu1 %861 }
 0x5b4   : > { %1557 = vpow2.f32 %v804_v40  ;;  %v869_v51 = vsel %vm632_vm2, %v862_v46, 0 }
 0x5b7   : > { %v860_v52 = vpop.permute.xlu1 %859 }
 0x5c1   : > { %v1558_v41 = vpop.eup %1557 }
 0x5c2   : > { %v806_v42 = vsel %vm682_vm4, %v1558_v41, 0.0 }
 0x5c3   : > { %807 = vadd.xlane.f32.xlu0 %v806_v42 }
 0x5d9   : > { %863 = vrot.lane.b32.xlu0 %v1922_v53, %s1700_s15  ;;  %s377_s15 = scalar_lea.vmem [#allocation7], %s1295_s22 }
 0x64c   : > { %v808_v43 = vpop.xlane.xlu0 %807 }
 0x64d   : > { %1559 = vrcp.f32 %v808_v43 }
 0x650   : > { %v864_v44 = vpop.permute.xlu0 %863 }
 0x651   : > { %v930_v45 = vsel %vm698_vm3, %v864_v44, 0  ;;  %v872_v50 = vsel %vm632_vm2, %v864_v44, 0 }
 0x652   : > { %1435 = vmatpush3.bf16.msra.mxu0 %v930_v45  ;;  %v741_v45 = vpack.c.bf16 %v1967_v29, %v1967_v29 }
 0x653   : > { %1436 = vmatprep.subr.bf16.mxu0 %v1697_v25 }
 0x656   : > { %1437 = vmatpush3.bf16.msra.mxu0 %v862_v46 }
 0x657   : > { %1442 = vmatprep.subr.bf16.mxu0 %v1697_v25 }
 0x65a   : > { %v1560_v47 = vpop.eup %1559 }
 0x65b   : > { %v810_v48 = vmul.f32 %v1560_v47, %v1558_v41 }
 0x65d   : > { %v811_v49 = vpack.c.bf16 %v810_v48, %v810_v48 }
 0x65f   : > { %1423 = vmatmul.mubr.msk.bf16.vlgmr.msra.gmra.mxu1 %vm682_vm4, %v811_v49 }
 0x660   : > { %1427 = vmatpush3.bf16.xpose.msra.mxu1 %v872_v50  ;;  %1430 = vmatprep.mubr.msk.bf16.mxu1 %vm1698_vm1, %v1697_v25 }
 0x661   : > { %1428 = vmatprep.subr.bf16.mxu1 %v1697_v25 }
 0x668   : > { %1429 = vmatpush3.bf16.xpose.msra.mxu1 %v869_v51 }
 0x669   : > { %1450 = vmatprep.subr.bf16.mxu1 %v1697_v25 }
 0x66f   : > { %1431 = vmatmul.mubr.msk.bf16.vlgmr.msra.gmra.mxu1 %vm632_vm2, %v860_v52 }
 0x670   : > { %1454 = vmatprep.mubr.msk.bf16.mxu1 %vm1698_vm1, %v1697_v25 }
 0x71f   : > { %v1987_v54 = vpop.f32.mrf.mxu1 }
 0x720   : > { %v858_v30 = vpack.c.bf16 %v1987_v54, %v1987_v54 }
 0x721   : > { %v1424_v55 = vpop.f32.mrf.mxu1 }
 0x723   : > { %v855_v56 = vpop.f32.mrf.mxu1 }
 0x725   : > { %v1425_v57 = vpop.f32.mrf.mxu1 }
 0x72f   : > { %v908_v58 = vpop.f32.mrf.mxu1 }
 0x730   : > { %v914_v59 = vsel %vm682_vm4, %v908_v58, -inf }
 0x731   : > { %915 = vmax.xlane.f32.xlu0 %v914_v59  ;;  %v1432_v60 = vpop.f32.mrf.mxu1 }
 0x733   : > { %v911_v61 = vpop.f32.mrf.mxu1 }
 0x735   : > { %v1433_v62 = vpop.f32.mrf.mxu1 }
 0x747   : > { %977 = vrot.lane.b32.xlu0 %v1922_v53, %s1701_s25 }
 0x74b   : > { %973 = vrot.lane.b32.xlu0 %v1943_v7, %s1701_s25 }
 0x7ba   : > { %v916_v63 = vpop.xlane.xlu0 %915 }
 0x7bb   : > { %v917_v0 = vsub.f32 %v908_v58, %v916_v63 }
 0x7bd   : > { %v918_v1 = vmul.f32 1.442695, %v917_v0 }
 0x7be   : > { %v978_v2 = vpop.permute.xlu0 %977 }
 0x7bf   : > { %1561 = vpow2.f32 %v918_v1  ;;  %v1044_v4 = vsel %vm698_vm3, %v978_v2, 0  ;;  %v986_v11 = vsel %vm632_vm2, %v978_v2, 0 }
 0x7c0   : > { %1451 = vmatpush3.bf16.msra.mxu1 %v1044_v4 }
 0x7c1   : > { %1452 = vmatprep.subr.bf16.mxu1 %v1697_v25 }
 0x7c2   : > { %v974_v12 = vpop.permute.xlu0 %973 }
 0x7cc   : > { %v1562_v5 = vpop.eup %1561 }
 0x7cd   : > { %v920_v6 = vsel %vm682_vm4, %v1562_v5, 0.0 }
 0x7ce   : > { %921 = vadd.xlane.f32.xlu1 %v920_v6 }
 0x7df   : > { %975 = vrot.lane.b32.xlu1 %v1933_v3, %s1701_s25  ;;  %s1194_s25 = sshll.u32 %s377_s15, 4  ;;  %s2037_s25 = int_to_ptr.vmem [resolvable:$true] %s1194_s25 }
 0x7e0   : > { %s1623_s18 = scalar_lea.vmem %s2037_s25, 128  ;;  %p1630_p2 = scmp.lt.s32.totalorder %s2037_s25, %s1628_s16 }
 0x7e1   : > { %p1624_p3 = scmp.ne.s32.totalorder %s2037_s25, %s1623_s18  ;;  %p1631_p13 = scmp.lt.s32.totalorder %s1629_s28, %s1623_s18 }
 0x7e3   : > { %p1625_p7 = pnand %p1624_p3, %p2112_p11  ;;  %p1632_p0 = por %p1631_p13, %p1630_p2 }
 0x7e5   : > { %p1626_p10 = pneg %p1625_p7 }
 0x7e7   : > { %p1633_p5 = pnand %p1632_p0, %p1626_p10 }
 0x857   : > { %v922_v8 = vpop.xlane.xlu1 %921 }
 0x858   : > { %1563 = vrcp.f32 %v922_v8 }
 0x85b   : > { %v976_v53 = vpop.permute.xlu1 %975 }
 0x85c   : > { %1453 = vmatpush3.bf16.msra.mxu1 %v976_v53  ;;  %v983_v3 = vsel %vm632_vm2, %v976_v53, 0 }
 0x85d   : > { %1458 = vmatprep.subr.bf16.mxu1 %v1697_v25 }
 0x865   : > { %v1564_v7 = vpop.eup %1563 }
 0x866   : > { %v924_v9 = vmul.f32 %v1564_v7, %v1562_v5 }
 0x868   : > { %v925_v10 = vpack.c.bf16 %v924_v9, %v924_v9 }
 0x86a   : > { %1439 = vmatmul.mubr.msk.bf16.vlgmr.msra.gmra.mxu0 %vm682_vm4, %v925_v10 }
 0x86b   : > { %1443 = vmatpush3.bf16.xpose.msra.mxu0 %v986_v11  ;;  %1446 = vmatprep.mubr.msk.bf16.mxu0 %vm1698_vm1, %v1697_v25 }
 0x86c   : > { %1444 = vmatprep.subr.bf16.mxu0 %v1697_v25 }
 0x873   : > { %1445 = vmatpush3.bf16.xpose.msra.mxu0 %v983_v3 }
 0x87a   : > { %1447 = vmatmul.mubr.msk.bf16.vlgmr.msra.gmra.mxu0 %vm632_vm2, %v974_v12 }
 0x92a   : > { %v966_v13 = vpop.f32.mrf.mxu0 }
 0x92b   : > { %v972_v22 = vpack.c.bf16 %v966_v13, %v966_v13 }
 0x92c   : > { %v1440_v14 = vpop.f32.mrf.mxu0 }
 0x92e   : > { %v969_v15 = vpop.f32.mrf.mxu0 }
 0x930   : > { %v1441_v16 = vpop.f32.mrf.mxu0 }
 0x93a   : > { %v1022_v17 = vpop.f32.mrf.mxu0 }
 0x93b   : > { %v1028_v18 = vsel %vm682_vm4, %v1022_v17, -inf }
 0x93c   : > { %1029 = vmax.xlane.f32.xlu1 %v1028_v18  ;;  %v1448_v19 = vpop.f32.mrf.mxu0 }
 0x93e   : > { %v1025_v20 = vpop.f32.mrf.mxu0 }
 0x940   : > { %v1449_v21 = vpop.f32.mrf.mxu0 }
 0x94d   : > { %1091 = vrot.lane.b32.xlu1 %v972_v22, %s1702_s24 }
 0x9c5   : > { %v1030_v23 = vpop.xlane.xlu1 %1029 }
 0x9c6   : > { %v1031_v24 = vsub.f32 %v1022_v17, %v1030_v23 }
 0x9c8   : > { %v1032_v26 = vmul.f32 1.442695, %v1031_v24 }
 0x9c9   : > { %v1092_v46 = vpop.permute.xlu1 %1091 }
 0x9ca   : > { %1565 = vpow2.f32 %v1032_v26 }
 0x9d7   : > { %v1566_v27 = vpop.eup %1565 }
 0x9d8   : > { %v1034_v28 = vsel %vm682_vm4, %v1566_v27, 0.0 }
 0x9d9   : > { %1035 = vadd.xlane.f32.xlu0 %v1034_v28 }
 0x9ef   : > { %1088 = vrot.lane.b32.xlu0 %v858_v30, %s1703_s20 }
 0xa62   : > { %v1036_v31 = vpop.xlane.xlu0 %1035 }
 0xa63   : > { %1567 = vrcp.f32 %v1036_v31 }
 0xa66   : > { %v1089_v44 = vpop.permute.xlu0 %1088 }
 0xa67   : > { %v1098_v47 = vsel %vm632_vm2, %v741_v45, %v1089_v44 }
 0xa70   : > { %v1568_v32 = vpop.eup %1567 }
 0xa71   : > { %v1038_v33 = vmul.f32 %v1568_v32, %v1566_v27 }
 0xa73   : > { %v1039_v34 = vpack.c.bf16 %v1038_v33, %v1038_v33 }
 0xa75   : > { %1455 = vmatmul.mubr.msk.bf16.vlgmr.msra.gmra.mxu1 %vm682_vm4, %v1039_v34 }
 0xa76   : > { %1466 = vmatprep.mubr.msk.bf16.mxu1 %vm1698_vm1, %v1697_v25  ;;  %1459 = vmatpush3.bf16.msra.mxu1 %v1543_v35 }
 0xa77   : > { %1460 = vmatprep.subr.bf16.mxu1 %v1697_v25 }
 0xa7a   : > { %1461 = vmatpush3.bf16.msra.mxu1 %v1544_v36 }
 0xa7b   : > { %1462 = vmatprep.subr.bf16.mxu1 %v1697_v25 }
 0xa7e   : > { %1463 = vmatpush3.bf16.msra.mxu1 %v1545_v37 }
 0xa7f   : > { %1464 = vmatprep.subr.bf16.mxu1 %v1697_v25  ;;  %v1100_v25 = vsel %vm388_vm0, %v1098_v47, %v1092_v46 }
 0xa82   : > { %1465 = vmatpush3.bf16.msra.mxu1 %v1546_v38 }
 0xb35   : > { %v1080_v39 = vpop.f32.mrf.mxu1 }
 0xb36   : > { %v1086_v40 = vpack.c.bf16 %v1080_v39, %v1080_v39 }
 0xb37   : > { %v1456_v41 = vpop.f32.mrf.mxu1 }
 0xb38   : > { %1094 = vrot.lane.b32.xlu1 %v1086_v40, %s1704_s27 }
 0xb39   : > { %v1083_v42 = vpop.f32.mrf.mxu1 }
 0xb3b   : > { %v1457_v43 = vpop.f32.mrf.mxu1 }
 0xbaa   : > { %v1095_v48 = vpop.permute.xlu1 %1094 }
 0xbab   : > { %v1103_v49 = vsel %vm1101_vm5, %v1100_v25, %v1095_v48 }
 0xbac   : > { %1467 = vmatmul.mubr.msk.bf16.vlgmr.msra.gmra.mxu1 %vm1136_vm6, %v1103_v49 }
 0xc6c   : > { %v1173_v29 = vpop.f32.mrf.mxu1 }
 0xc6d   : > { %1179 = vst.msk [vmem:[%s377_s15] sm:$0xff] %vm388_vm0, %v1173_v29 }
 0xc6e   : > { %v1468_v50 = vpop.f32.mrf.mxu1 }
 0xc6f   : > { %1636 = shalt.err (!%p1633_p5)
}
 0xc70   : > { %s1637_s6 = scalar_lea.hbm %s2035_s21, 128  ;;  %s1641_s29 = scalar_lea.hbm %s2088_s9, 256 }
 0xc71   : > { %p1638_p9 = scmp.ne.s32.totalorder %s2035_s21, %s1637_s6  ;;  %p1642_p4 = scmp.lt.s32.totalorder %s2035_s21, %s2088_s9 }
 0xc72   : > { %p1643_p6 = scmp.lt.s32.totalorder %s1641_s29, %s1637_s6 }
 0xc73   : > { %p1639_p12 = pnand %p1638_p9, %p2112_p11 }
 0xc74   : > { %p1644_p8 = por %p1643_p6, %p1642_p4 }
 0xc75   : > { %p1640_p1 = pneg %p1639_p12 }
 0xc77   : > { %p1645_p3 = pnand %p1644_p8, %p1640_p1 }
 0xc79   : > { %1648 = shalt.err (!%p1645_p3)
}
 0xc7a   : > { %1476 = dma.vmem_to_hbm [thread:$0]  (%p2112_p11), %s2037_s25, 128, %s2035_s21, %s1181_s19   ;;  %v1176_v51 = vpop.f32.mrf.mxu1 }
 0xc7c   : > { %v1469_v52 = vpop.f32.mrf.mxu1 }
 0xc7d PF: > { %s2113_s23 = sld [smem:[#allocation11_spill]]  ;;  %s1206_s15 = sand.u32 1, %s1679_s30  }
 0xc7e   : > { %p2115_p10 = scmp.ge.s32.totalorder %s1691_s12, 2  ;;  %s1207_s24 = scalar_lea.sflag [#allocation4], %s1206_s15 }
 0xc83   : > { %p2114_p7 = scmp.ne.s32.totalorder %s2113_s23, 0 }
 0xc85   : > { %p1487_p2 = pnand %p2115_p10, %p2114_p7 }
 0xc87   : > { %p1488_p13 = pneg %p1487_p2 }
 0xc89   : > { %1674 = dma.done.wait (%p1488_p13), %s1207_s24, 128  }
 0xc8a   : > { %1676 = vsyncadd (%p1488_p13), %s1207_s24, 4294967168  ;;  %s2116_s12 = sld [smem:[#allocation12_spill]]  ;;  %s2118_s30 = smov %s1683_s10 }
 0xc8b   : > { %s2117_s14 = sld [smem:[#allocation13_spill]]  ;;  %s2119_s10 = smov %s1687_s11 }
 0xc90   : > { %p23_p11 = scmp.ge.s32.totalorder %s2116_s12, 4  }
 0xc91   : > { %s2120_s11 = smov %s2117_s14 }
 0xc92   :  { %25 = sbr.rel (!%p23_p11) target bundleno = 8 (0x8), region = 108 }
 0xc97   :  { %1212 = vsyncpa [#allocation3], 1 }
 0xc98   :  { %1214 = vsyncpa [#allocation3 + $0x1], 1 }
 0xc99   :  { %1215 = vsyncpa [#allocation6], 1 }
 0xc9a   :  { %1216 = vsyncpa [#allocation4], 1 }
 0xc9b   :  { %1218 = vsyncpa [#allocation4 + $0x1], 1 }

</bundles_post_ra>
